<compile_context>
chip_gen: v7x
topology: tpu7x:2x2x1
jax: 0.10.0
libtpu: 0.0.40
codegen_flags: <defaults>
</compile_context>

<pallas_src>
import functools

import jax
import jax.numpy as jnp
from jax.experimental import pallas as pl
from jax.experimental.pallas import tpu as pltpu

EPS = 1e-5  # torch BatchNorm1d default eps


# --------------------------------- kernel ------------------------------------
def _multiscale_kernel(num_layers,
                       x_ref, w1_ref, w2_ref, lw_ref, hw_ref,
                       bias_ref, bn_ref, hb_ref, out_ref):
  """Fused MultiScaleCNN forward.

  x_ref:    (B, L, Cin)          compute dtype (bf16 or f32)
  w1_ref:   (k_max*Cin, cat)     fused stage-1 conv weight (all scales)
  w2_ref:   (k_max*cat, cat)     fused stage-2 conv weight
  lw_ref:   (cat, cat)           MoBY hidden linear (used iff num_layers >= 2)
  hw_ref:   (cat, T*out_dim)     fused task-head weights
  bias_ref: (3, cat)    f32      [conv1 bias | conv2 bias | linear bias]
  bn_ref:   (6, cat)    f32      [g1, b1, g2, b2, gm, bm]
  hb_ref:   (1, T*out_dim) f32   fused head bias
  out_ref:  (B*L, T*out_dim) f32
  """
  B, L, Cin = x_ref.shape
  cat = w1_ref.shape[1]
  cdt = w1_ref.dtype                                   # MXU operand dtype

  def im2col(x, k):
    """(B, L, C) -> (B*L, k*C) slab, 'same' zero padding (odd k, stride 1)."""
    Bx, Lx, C = x.shape
    pad = (k - 1) // 2
    z = jnp.zeros((Bx, pad, C), x.dtype)
    xp = jnp.concatenate([z, x, z], axis=1)
    cols = [xp[:, j:j + Lx, :] for j in range(k)]
    return jnp.concatenate(cols, axis=-1).reshape(Bx * Lx, k * C)

  def bn_relu(y, idx):
    """Training-mode BatchNorm1d (batch stats, biased var) + ReLU, all f32."""
    g = bn_ref[2 * idx:2 * idx + 1, :]
    b = bn_ref[2 * idx + 1:2 * idx + 2, :]
    m = jnp.mean(y, axis=0, keepdims=True)
    v = jnp.mean((y - m) ** 2, axis=0, keepdims=True)
    return jnp.maximum((y - m) * jax.lax.rsqrt(v + EPS) * g + b, 0.0)

  # --- stage 1: all scales fused into one matmul (concat baked into weights) ---
  k1 = w1_ref.shape[0] // Cin
  s1 = im2col(x_ref[...], k1)                                     # (B*L, k1*Cin)
  y1 = jnp.dot(s1, w1_ref[...], preferred_element_type=jnp.float32)
  h1 = bn_relu(y1 + bias_ref[0:1, :], 0)                          # f32 (B*L, cat)
  # Dropout(p=0.0) is the identity for this config.
  # TODO(synk): p > 0 (train mode) would need pltpu.prng_seed / prng_random_bits.

  # --- stage 2 ---
  k2 = w2_ref.shape[0] // cat
  s2 = im2col(h1.astype(cdt).reshape(B, L, cat), k2)              # (B*L, k2*cat)
  y2 = jnp.dot(s2, w2_ref[...], preferred_element_type=jnp.float32)
  h = bn_relu(y2 + bias_ref[1:2, :], 1)

  # --- MoBYMLP_multihead hidden: Identity / (Linear -> BN -> ReLU) ---
  if num_layers >= 2:
    y3 = jnp.dot(h.astype(cdt), lw_ref[...],
                 preferred_element_type=jnp.float32) + bias_ref[2:3, :]
    h = bn_relu(y3, 2)

  # --- fused task heads: one matmul, one lane-dense store ---
  out = jnp.dot(h.astype(cdt), hw_ref[...],
                preferred_element_type=jnp.float32) + hb_ref[...]
  out_ref[...] = out.astype(out_ref.dtype)


# ------------------------- parameter fusion / packing ------------------------
def _fuse_conv_weights(ws, bs):
  """Per-scale torch Conv1d weights (Cout, Cin, k_i) -> (k_max*Cin, n*Cout) fused
  matrix (taps zero-padded to common k_max, scales concatenated along Cout), plus
  the concatenated bias (1, n*Cout)."""
  k_max = max(int(w.shape[2]) for w in ws)
  pad_max = (k_max - 1) // 2
  cin, cout = int(ws[0].shape[1]), int(ws[0].shape[0])
  blocks = []
  for j in range(k_max):
    row = []
    for w in ws:
      k_i = int(w.shape[2])
      jp = j - (pad_max - (k_i - 1) // 2)            # tap index within this scale
      if 0 <= jp < k_i:
        row.append(jnp.transpose(w[:, :, jp], (1, 0)))   # (Cin, Cout)
      else:
        row.append(jnp.zeros((cin, cout), w.dtype))
    blocks.append(jnp.concatenate(row, axis=1))          # (Cin, n*Cout)
  wf = jnp.concatenate(blocks, axis=0)                   # (k_max*Cin, n*Cout)
  bf = jnp.concatenate([b.reshape(1, -1) for b in bs], axis=1)
  return wf, bf


def pack_params(p, compute_dtype=jnp.bfloat16):
  """Torch-layout params -> packed kernel operands (fused weights, packed smalls)."""
  cdt = compute_dtype
  w1, b1 = _fuse_conv_weights(p["conv1_w"], p["conv1_b"])
  w2, b2 = _fuse_conv_weights(p["conv2_w"], p["conv2_b"])
  cat = int(w1.shape[1])
  num_layers = p["num_layers"]
  if num_layers >= 2:
    lw = jnp.transpose(p["lin_w"], (1, 0))               # torch (out,in) -> (in,out)
    lb = p["lin_b"].reshape(1, -1)
    bnm_g, bnm_b = p["bnm_g"], p["bnm_b"]
  else:                                                  # hidden = Identity
    lw = jnp.zeros((cat, cat), jnp.float32)
    lb = jnp.zeros((1, cat), jnp.float32)
    bnm_g = jnp.ones((cat,), jnp.float32)
    bnm_b = jnp.zeros((cat,), jnp.float32)
  hw = jnp.concatenate([jnp.transpose(w, (1, 0)) for w in p["heads_w"]], axis=1)
  hb = jnp.concatenate([b.reshape(1, -1) for b in p["heads_b"]], axis=1)
  biases = jnp.concatenate([b1, b2, lb], axis=0)                         # (3, cat)
  bn = jnp.stack([p["bn1_g"], p["bn1_b"], p["bn2_g"], p["bn2_b"],
                  bnm_g, bnm_b], axis=0)                                 # (6, cat)
  return dict(
      w1=w1.astype(cdt), w2=w2.astype(cdt), lw=lw.astype(cdt), hw=hw.astype(cdt),
      biases=biases.astype(jnp.float32), bn=bn.astype(jnp.float32),
      hb=hb.astype(jnp.float32),
      num_layers=num_layers, num_tasks=len(p["heads_w"]),
      out_dim=int(p["heads_w"][0].shape[0]))


# --------------------------------- wrapper -----------------------------------
def multiscale_cnn_forward(x, packed):
  """x: (B, L, Cin). Returns list of num_tasks arrays (B, L, out_dim)."""
  B, L, _ = x.shape
  cdt = packed["w1"].dtype
  num_layers = packed["num_layers"]
  num_tasks = packed["num_tasks"]
  out_dim = packed["out_dim"]
  t_out = num_tasks * out_dim

  inputs = [x.astype(cdt), packed["w1"], packed["w2"], packed["lw"], packed["hw"],
            packed["biases"], packed["bn"], packed["hb"]]

  in_bytes = sum(int(a.size) * a.dtype.itemsize for a in inputs)
  out_bytes = B * L * t_out * 4
  flops = 2 * B * L * (
      int(packed["w1"].shape[0]) * int(packed["w1"].shape[1]) +
      int(packed["w2"].shape[0]) * int(packed["w2"].shape[1]) +
      (int(packed["lw"].shape[0]) * int(packed["lw"].shape[1]) if num_layers >= 2 else 0) +
      int(packed["hw"].shape[0]) * int(packed["hw"].shape[1]))
  vmem_limit = int(min(max(8 * (in_bytes + out_bytes), 16 << 20), 32 << 20))

  kernel = functools.partial(_multiscale_kernel, num_layers)
  out = pl.pallas_call(
      kernel,
      out_shape=jax.ShapeDtypeStruct((B * L, t_out), jnp.float32),
      in_specs=[pl.BlockSpec(memory_space=pltpu.MemorySpace.VMEM)] * len(inputs),
      out_specs=pl.BlockSpec(memory_space=pltpu.MemorySpace.VMEM),
      compiler_params=pltpu.CompilerParams(vmem_limit_bytes=vmem_limit),
      cost_estimate=pl.CostEstimate(flops=flops,
                                    transcendentals=3 * int(packed["bn"].shape[1]),
                                    bytes_accessed=in_bytes + out_bytes),
  )(*inputs)
  # nn.Module returns a list of per-task tensors of shape (B, seqlen, out_dim)
  return [out[:, t * out_dim:(t + 1) * out_dim].reshape(B, L, out_dim)
          for t in range(num_tasks)]


# --------------------------- deterministic params ----------------------------
def init_torch_params(key, in_channels, out_channels, kernel_sizes, output_dim,
                      num_layers, num_tasks):
  """Parameters in PyTorch layouts (Conv1d (Cout,Cin,k), Linear (out,in))."""
  n = len(kernel_sizes)
  cat = out_channels * n
  keys = iter(jax.random.split(key, 4 * n + 10 + 2 * num_tasks))

  def nrm(shape, scale=0.2):
    return (scale * jax.random.normal(next(keys), shape)).astype(jnp.float32)

  return dict(
      conv1_w=[nrm((out_channels, in_channels, k)) for k in kernel_sizes],
      conv1_b=[nrm((out_channels,)) for _ in kernel_sizes],
      bn1_g=1.0 + nrm((cat,), 0.1), bn1_b=nrm((cat,), 0.1),
      conv2_w=[nrm((out_channels, cat, k)) for k in kernel_sizes],
      conv2_b=[nrm((out_channels,)) for _ in kernel_sizes],
      bn2_g=1.0 + nrm((cat,), 0.1), bn2_b=nrm((cat,), 0.1),
      lin_w=nrm((cat, cat)), lin_b=nrm((cat,)),
      bnm_g=1.0 + nrm((cat,), 0.1), bnm_b=nrm((cat,), 0.1),
      heads_w=[nrm((output_dim, cat)) for _ in range(num_tasks)],
      heads_b=[nrm((output_dim,)) for _ in range(num_tasks)],
      num_layers=num_layers,
  )


# ------------------------------ pure-JAX reference ---------------------------
def reference_forward(x, p, compute_dtype=jnp.float32):
  """Per-scale / per-tap reference; matmul operands cast to compute_dtype with
  f32 accumulation (mirrors the kernel's precision choices)."""
  cdt = compute_dtype
  B, L, _ = x.shape

  def conv_branch(xc, w, b):               # xc: (B,L,Cin) cdt, w: (Cout,Cin,k)
    k = int(w.shape[2])
    pad = (k - 1) // 2
    xp = jnp.pad(xc, ((0, 0), (pad, pad), (0, 0)))
    wc = w.astype(cdt)
    y = sum(jnp.einsum('blc,oc->blo', xp[:, j:j + L, :], wc[:, :, j],
                       preferred_element_type=jnp.float32) for j in range(k))
    return y + b.reshape(1, 1, -1)

  def bn_relu(y, g, bt):
    m = y.mean(0, keepdims=True)
    v = ((y - m) ** 2).mean(0, keepdims=True)
    return jnp.maximum((y - m) * jax.lax.rsqrt(v + EPS) * g.reshape(1, -1)
                       + bt.reshape(1, -1), 0.0)

  xc = x.astype(cdt)
  y1 = jnp.concatenate([conv_branch(xc, w, b)
                        for w, b in zip(p["conv1_w"], p["conv1_b"])], -1)
  C1 = y1.shape[-1]
  h1 = bn_relu(y1.reshape(B * L, C1), p["bn1_g"], p["bn1_b"])
  y2 = jnp.concatenate([conv_branch(h1.astype(cdt).reshape(B, L, C1), w, b)
                        for w, b in zip(p["conv2_w"], p["conv2_b"])], -1)
  C2 = y2.shape[-1]
  h = bn_relu(y2.reshape(B * L, C2), p["bn2_g"], p["bn2_b"])
  if p["num_layers"] >= 2:
    y3 = jnp.dot(h.astype(cdt), jnp.transpose(p["lin_w"], (1, 0)).astype(cdt),
                 preferred_element_type=jnp.float32) + p["lin_b"].reshape(1, -1)
    h = bn_relu(y3, p["bnm_g"], p["bnm_b"])
  outs = []
  for wt, bt in zip(p["heads_w"], p["heads_b"]):
    o = jnp.dot(h.astype(cdt), jnp.transpose(wt, (1, 0)).astype(cdt),
                preferred_element_type=jnp.float32) + bt.reshape(1, -1)
    outs.append(o.reshape(B, L, -1))
  return outs


# ----------------------------------- main ------------------------------------
if __name__ == "__main__":
  # config (mirrors configs.projector / configs.encoder.prompt)
  in_channels = 4
  out_channels = 8
  kernel_sizes = [3, 5]          # odd sizes -> symmetric 'same' padding
  output_dim = 8
  num_layers = 2
  num_tasks = 2
  B, L = 2, 16

  key = jax.random.PRNGKey(0)
  kx, kp = jax.random.split(key)
  x = jax.random.normal(kx, (B, L, in_channels), jnp.float32)   # (batch, seq, in_ch)
  p = init_torch_params(kp, in_channels, out_channels, kernel_sizes,
                        output_dim, num_layers, num_tasks)

  # 1) f32 path: validates module semantics against a pure-f32 reference.
  packed_f32 = pack_params(p, jnp.float32)
  outs32 = [jax.block_until_ready(o) for o in multiscale_cnn_forward(x, packed_f32)]
  refs32 = reference_forward(x, p, jnp.float32)
  for o, r in zip(outs32, refs32):
    assert o.shape == (B, L, output_dim)
    assert jnp.allclose(o, r, atol=2e-3, rtol=2e-3)

  # 2) bf16-MXU path (perf default): reference mirrors the same cast points,
  #    so only accumulation-order differences remain.
  packed_bf16 = pack_params(p, jnp.bfloat16)
  outs16 = [jax.block_until_ready(o) for o in multiscale_cnn_forward(x, packed_bf16)]
  refs16 = reference_forward(x, p, jnp.bfloat16)
  for o, r in zip(outs16, refs16):
    assert o.shape == (B, L, output_dim)
    assert jnp.allclose(o, r, atol=2e-2, rtol=2e-2)

  print("KERNEL_OK")
</pallas_src>

<mosaic_0001>
module attributes {stable_mosaic.version = 11 : i64} {
  func.func @_multiscale_kernel(%arg0: memref<2x16x4xf32, #tpu.memory_space<vmem>>, %arg1: memref<20x16xf32, #tpu.memory_space<vmem>>, %arg2: memref<80x16xf32, #tpu.memory_space<vmem>>, %arg3: memref<16x16xf32, #tpu.memory_space<vmem>>, %arg4: memref<16x16xf32, #tpu.memory_space<vmem>>, %arg5: memref<3x16xf32, #tpu.memory_space<vmem>>, %arg6: memref<6x16xf32, #tpu.memory_space<vmem>>, %arg7: memref<1x16xf32, #tpu.memory_space<vmem>>, %arg8: memref<32x16xf32, #tpu.memory_space<vmem>>) attributes {dimension_semantics = [], scalar_prefetch = 0 : i64, scratch_operands = 0 : i64, tpu.core_type = #tpu.core_type<tc>} {
    %c0 = arith.constant 0 : index
    %c0_0 = arith.constant 0 : index
    %c0_1 = arith.constant 0 : index
    %0 = vector.load %arg0[%c0, %c0_0, %c0_1] : memref<2x16x4xf32, #tpu.memory_space<vmem>>, vector<2x16x4xf32>
    %cst = arith.constant 0.000000e+00 : f32
    %1 = vector.broadcast %cst : f32 to vector<2x2x4xf32>
    %2 = tpu.concatenate %1, %0, %1 in 1 : vector<2x2x4xf32>, vector<2x16x4xf32>, vector<2x2x4xf32> -> vector<2x20x4xf32>
    %3 = vector.extract_strided_slice %2 {offsets = [0, 0, 0], sizes = [2, 16, 4], strides = [1, 1, 1]} : vector<2x20x4xf32> to vector<2x16x4xf32>
    %4 = vector.extract_strided_slice %2 {offsets = [0, 1, 0], sizes = [2, 16, 4], strides = [1, 1, 1]} : vector<2x20x4xf32> to vector<2x16x4xf32>
    %5 = vector.extract_strided_slice %2 {offsets = [0, 2, 0], sizes = [2, 16, 4], strides = [1, 1, 1]} : vector<2x20x4xf32> to vector<2x16x4xf32>
    %6 = vector.extract_strided_slice %2 {offsets = [0, 3, 0], sizes = [2, 16, 4], strides = [1, 1, 1]} : vector<2x20x4xf32> to vector<2x16x4xf32>
    %7 = vector.extract_strided_slice %2 {offsets = [0, 4, 0], sizes = [2, 16, 4], strides = [1, 1, 1]} : vector<2x20x4xf32> to vector<2x16x4xf32>
    %8 = tpu.concatenate %3, %4, %5, %6, %7 in 2 : vector<2x16x4xf32>, vector<2x16x4xf32>, vector<2x16x4xf32>, vector<2x16x4xf32>, vector<2x16x4xf32> -> vector<2x16x20xf32>
    %9 = vector.shape_cast %8 : vector<2x16x20xf32> to vector<32x20xf32>
    %c0_2 = arith.constant 0 : index
    %c0_3 = arith.constant 0 : index
    %10 = vector.load %arg1[%c0_2, %c0_3] : memref<20x16xf32, #tpu.memory_space<vmem>>, vector<20x16xf32>
    %cst_4 = arith.constant dense<0.000000e+00> : vector<32x16xf32>
    %11 = tpu.matmul %9, %10, %cst_4 {dimension_numbers = #tpu.dot_dimension_numbers<[1], [0], [0], [1], [0, 0, 1, 1], [], []>} : vector<32x20xf32>, vector<20x16xf32>, vector<32x16xf32> -> vector<32x16xf32>
    %c0_5 = arith.constant 0 : index
    %c0_6 = arith.constant 0 : index
    %12 = vector.load %arg5[%c0_5, %c0_6] : memref<3x16xf32, #tpu.memory_space<vmem>>, vector<1x16xf32>
    %13 = vector.broadcast %12 : vector<1x16xf32> to vector<32x16xf32>
    %14 = arith.addf %11, %13 : vector<32x16xf32>
    %c0_7 = arith.constant 0 : index
    %c0_8 = arith.constant 0 : index
    %15 = vector.load %arg6[%c0_7, %c0_8] : memref<6x16xf32, #tpu.memory_space<vmem>>, vector<1x16xf32>
    %c1 = arith.constant 1 : index
    %c0_9 = arith.constant 0 : index
    %16 = vector.load %arg6[%c1, %c0_9] : memref<6x16xf32, #tpu.memory_space<vmem>>, vector<1x16xf32>
    %cst_10 = arith.constant dense<0.000000e+00> : vector<16xf32>
    %17 = vector.multi_reduction <add>, %14, %cst_10 [0] : vector<32x16xf32> to vector<16xf32>
    %18 = vector.shape_cast %17 : vector<16xf32> to vector<1x16xf32>
    %cst_11 = arith.constant 3.200000e+01 : f32
    %19 = vector.broadcast %cst_11 : f32 to vector<1x16xf32>
    %20 = arith.divf %18, %19 : vector<1x16xf32>
    %21 = vector.broadcast %20 : vector<1x16xf32> to vector<32x16xf32>
    %22 = arith.subf %14, %21 : vector<32x16xf32>
    %23 = arith.mulf %22, %22 : vector<32x16xf32>
    %cst_12 = arith.constant dense<0.000000e+00> : vector<16xf32>
    %24 = vector.multi_reduction <add>, %23, %cst_12 [0] : vector<32x16xf32> to vector<16xf32>
    %25 = vector.shape_cast %24 : vector<16xf32> to vector<1x16xf32>
    %cst_13 = arith.constant 3.200000e+01 : f32
    %26 = vector.broadcast %cst_13 : f32 to vector<1x16xf32>
    %27 = arith.divf %25, %26 : vector<1x16xf32>
    %28 = vector.broadcast %20 : vector<1x16xf32> to vector<32x16xf32>
    %29 = arith.subf %14, %28 : vector<32x16xf32>
    %cst_14 = arith.constant 9.99999974E-6 : f32
    %30 = vector.broadcast %cst_14 : f32 to vector<1x16xf32>
    %31 = arith.addf %27, %30 : vector<1x16xf32>
    %32 = math.rsqrt %31 : vector<1x16xf32>
    %33 = vector.broadcast %32 : vector<1x16xf32> to vector<32x16xf32>
    %34 = arith.mulf %29, %33 : vector<32x16xf32>
    %35 = vector.broadcast %15 : vector<1x16xf32> to vector<32x16xf32>
    %36 = arith.mulf %34, %35 : vector<32x16xf32>
    %37 = vector.broadcast %16 : vector<1x16xf32> to vector<32x16xf32>
    %38 = arith.addf %36, %37 : vector<32x16xf32>
    %cst_15 = arith.constant 0.000000e+00 : f32
    %39 = vector.broadcast %cst_15 : f32 to vector<32x16xf32>
    %40 = arith.maximumf %38, %39 : vector<32x16xf32>
    %41 = vector.shape_cast %40 : vector<32x16xf32> to vector<2x16x16xf32>
    %cst_16 = arith.constant 0.000000e+00 : f32
    %42 = vector.broadcast %cst_16 : f32 to vector<2x2x16xf32>
    %43 = tpu.concatenate %42, %41, %42 in 1 : vector<2x2x16xf32>, vector<2x16x16xf32>, vector<2x2x16xf32> -> vector<2x20x16xf32>
    %44 = vector.extract_strided_slice %43 {offsets = [0, 0, 0], sizes = [2, 16, 16], strides = [1, 1, 1]} : vector<2x20x16xf32> to vector<2x16x16xf32>
    %45 = vector.extract_strided_slice %43 {offsets = [0, 1, 0], sizes = [2, 16, 16], strides = [1, 1, 1]} : vector<2x20x16xf32> to vector<2x16x16xf32>
    %46 = vector.extract_strided_slice %43 {offsets = [0, 2, 0], sizes = [2, 16, 16], strides = [1, 1, 1]} : vector<2x20x16xf32> to vector<2x16x16xf32>
    %47 = vector.extract_strided_slice %43 {offsets = [0, 3, 0], sizes = [2, 16, 16], strides = [1, 1, 1]} : vector<2x20x16xf32> to vector<2x16x16xf32>
    %48 = vector.extract_strided_slice %43 {offsets = [0, 4, 0], sizes = [2, 16, 16], strides = [1, 1, 1]} : vector<2x20x16xf32> to vector<2x16x16xf32>
    %49 = tpu.concatenate %44, %45, %46, %47, %48 in 2 : vector<2x16x16xf32>, vector<2x16x16xf32>, vector<2x16x16xf32>, vector<2x16x16xf32>, vector<2x16x16xf32> -> vector<2x16x80xf32>
    %50 = vector.shape_cast %49 : vector<2x16x80xf32> to vector<32x80xf32>
    %c0_17 = arith.constant 0 : index
    %c0_18 = arith.constant 0 : index
    %51 = vector.load %arg2[%c0_17, %c0_18] : memref<80x16xf32, #tpu.memory_space<vmem>>, vector<80x16xf32>
    %cst_19 = arith.constant dense<0.000000e+00> : vector<32x16xf32>
    %52 = tpu.matmul %50, %51, %cst_19 {dimension_numbers = #tpu.dot_dimension_numbers<[1], [0], [0], [1], [0, 0, 1, 1], [], []>} : vector<32x80xf32>, vector<80x16xf32>, vector<32x16xf32> -> vector<32x16xf32>
    %c1_20 = arith.constant 1 : index
    %c0_21 = arith.constant 0 : index
    %53 = vector.load %arg5[%c1_20, %c0_21] : memref<3x16xf32, #tpu.memory_space<vmem>>, vector<1x16xf32>
    %54 = vector.broadcast %53 : vector<1x16xf32> to vector<32x16xf32>
    %55 = arith.addf %52, %54 : vector<32x16xf32>
    %c2 = arith.constant 2 : index
    %c0_22 = arith.constant 0 : index
    %56 = vector.load %arg6[%c2, %c0_22] : memref<6x16xf32, #tpu.memory_space<vmem>>, vector<1x16xf32>
    %c3 = arith.constant 3 : index
    %c0_23 = arith.constant 0 : index
    %57 = vector.load %arg6[%c3, %c0_23] : memref<6x16xf32, #tpu.memory_space<vmem>>, vector<1x16xf32>
    %cst_24 = arith.constant dense<0.000000e+00> : vector<16xf32>
    %58 = vector.multi_reduction <add>, %55, %cst_24 [0] : vector<32x16xf32> to vector<16xf32>
    %59 = vector.shape_cast %58 : vector<16xf32> to vector<1x16xf32>
    %cst_25 = arith.constant 3.200000e+01 : f32
    %60 = vector.broadcast %cst_25 : f32 to vector<1x16xf32>
    %61 = arith.divf %59, %60 : vector<1x16xf32>
    %62 = vector.broadcast %61 : vector<1x16xf32> to vector<32x16xf32>
    %63 = arith.subf %55, %62 : vector<32x16xf32>
    %64 = arith.mulf %63, %63 : vector<32x16xf32>
    %cst_26 = arith.constant dense<0.000000e+00> : vector<16xf32>
    %65 = vector.multi_reduction <add>, %64, %cst_26 [0] : vector<32x16xf32> to vector<16xf32>
    %66 = vector.shape_cast %65 : vector<16xf32> to vector<1x16xf32>
    %cst_27 = arith.constant 3.200000e+01 : f32
    %67 = vector.broadcast %cst_27 : f32 to vector<1x16xf32>
    %68 = arith.divf %66, %67 : vector<1x16xf32>
    %69 = vector.broadcast %61 : vector<1x16xf32> to vector<32x16xf32>
    %70 = arith.subf %55, %69 : vector<32x16xf32>
    %cst_28 = arith.constant 9.99999974E-6 : f32
    %71 = vector.broadcast %cst_28 : f32 to vector<1x16xf32>
    %72 = arith.addf %68, %71 : vector<1x16xf32>
    %73 = math.rsqrt %72 : vector<1x16xf32>
    %74 = vector.broadcast %73 : vector<1x16xf32> to vector<32x16xf32>
    %75 = arith.mulf %70, %74 : vector<32x16xf32>
    %76 = vector.broadcast %56 : vector<1x16xf32> to vector<32x16xf32>
    %77 = arith.mulf %75, %76 : vector<32x16xf32>
    %78 = vector.broadcast %57 : vector<1x16xf32> to vector<32x16xf32>
    %79 = arith.addf %77, %78 : vector<32x16xf32>
    %cst_29 = arith.constant 0.000000e+00 : f32
    %80 = vector.broadcast %cst_29 : f32 to vector<32x16xf32>
    %81 = arith.maximumf %79, %80 : vector<32x16xf32>
    %c0_30 = arith.constant 0 : index
    %c0_31 = arith.constant 0 : index
    %82 = vector.load %arg3[%c0_30, %c0_31] : memref<16x16xf32, #tpu.memory_space<vmem>>, vector<16x16xf32>
    %cst_32 = arith.constant dense<0.000000e+00> : vector<32x16xf32>
    %83 = tpu.matmul %81, %82, %cst_32 {dimension_numbers = #tpu.dot_dimension_numbers<[1], [0], [0], [1], [0, 0, 1, 1], [], []>} : vector<32x16xf32>, vector<16x16xf32>, vector<32x16xf32> -> vector<32x16xf32>
    %c2_33 = arith.constant 2 : index
    %c0_34 = arith.constant 0 : index
    %84 = vector.load %arg5[%c2_33, %c0_34] : memref<3x16xf32, #tpu.memory_space<vmem>>, vector<1x16xf32>
    %85 = vector.broadcast %84 : vector<1x16xf32> to vector<32x16xf32>
    %86 = arith.addf %83, %85 : vector<32x16xf32>
    %c4 = arith.constant 4 : index
    %c0_35 = arith.constant 0 : index
    %87 = vector.load %arg6[%c4, %c0_35] : memref<6x16xf32, #tpu.memory_space<vmem>>, vector<1x16xf32>
    %c5 = arith.constant 5 : index
    %c0_36 = arith.constant 0 : index
    %88 = vector.load %arg6[%c5, %c0_36] : memref<6x16xf32, #tpu.memory_space<vmem>>, vector<1x16xf32>
    %cst_37 = arith.constant dense<0.000000e+00> : vector<16xf32>
    %89 = vector.multi_reduction <add>, %86, %cst_37 [0] : vector<32x16xf32> to vector<16xf32>
    %90 = vector.shape_cast %89 : vector<16xf32> to vector<1x16xf32>
    %cst_38 = arith.constant 3.200000e+01 : f32
    %91 = vector.broadcast %cst_38 : f32 to vector<1x16xf32>
    %92 = arith.divf %90, %91 : vector<1x16xf32>
    %93 = vector.broadcast %92 : vector<1x16xf32> to vector<32x16xf32>
    %94 = arith.subf %86, %93 : vector<32x16xf32>
    %95 = arith.mulf %94, %94 : vector<32x16xf32>
    %cst_39 = arith.constant dense<0.000000e+00> : vector<16xf32>
    %96 = vector.multi_reduction <add>, %95, %cst_39 [0] : vector<32x16xf32> to vector<16xf32>
    %97 = vector.shape_cast %96 : vector<16xf32> to vector<1x16xf32>
    %cst_40 = arith.constant 3.200000e+01 : f32
    %98 = vector.broadcast %cst_40 : f32 to vector<1x16xf32>
    %99 = arith.divf %97, %98 : vector<1x16xf32>
    %100 = vector.broadcast %92 : vector<1x16xf32> to vector<32x16xf32>
    %101 = arith.subf %86, %100 : vector<32x16xf32>
    %cst_41 = arith.constant 9.99999974E-6 : f32
    %102 = vector.broadcast %cst_41 : f32 to vector<1x16xf32>
    %103 = arith.addf %99, %102 : vector<1x16xf32>
    %104 = math.rsqrt %103 : vector<1x16xf32>
    %105 = vector.broadcast %104 : vector<1x16xf32> to vector<32x16xf32>
    %106 = arith.mulf %101, %105 : vector<32x16xf32>
    %107 = vector.broadcast %87 : vector<1x16xf32> to vector<32x16xf32>
    %108 = arith.mulf %106, %107 : vector<32x16xf32>
    %109 = vector.broadcast %88 : vector<1x16xf32> to vector<32x16xf32>
    %110 = arith.addf %108, %109 : vector<32x16xf32>
    %cst_42 = arith.constant 0.000000e+00 : f32
    %111 = vector.broadcast %cst_42 : f32 to vector<32x16xf32>
    %112 = arith.maximumf %110, %111 : vector<32x16xf32>
    %c0_43 = arith.constant 0 : index
    %c0_44 = arith.constant 0 : index
    %113 = vector.load %arg4[%c0_43, %c0_44] : memref<16x16xf32, #tpu.memory_space<vmem>>, vector<16x16xf32>
    %cst_45 = arith.constant dense<0.000000e+00> : vector<32x16xf32>
    %114 = tpu.matmul %112, %113, %cst_45 {dimension_numbers = #tpu.dot_dimension_numbers<[1], [0], [0], [1], [0, 0, 1, 1], [], []>} : vector<32x16xf32>, vector<16x16xf32>, vector<32x16xf32> -> vector<32x16xf32>
    %c0_46 = arith.constant 0 : index
    %c0_47 = arith.constant 0 : index
    %115 = vector.load %arg7[%c0_46, %c0_47] : memref<1x16xf32, #tpu.memory_space<vmem>>, vector<1x16xf32>
    %116 = vector.broadcast %115 : vector<1x16xf32> to vector<32x16xf32>
    %117 = arith.addf %114, %116 : vector<32x16xf32>
    %c0_48 = arith.constant 0 : index
    %c0_49 = arith.constant 0 : index
    %118 = vector.load %arg8[%c0_48, %c0_49] : memref<32x16xf32, #tpu.memory_space<vmem>>, vector<32x16xf32>
    tpu.vector_store %arg8[%c0_48, %c0_49], %117 {strides = array<i32>} : memref<32x16xf32, #tpu.memory_space<vmem>>, vector<32x16xf32>,
    return
  }
}

</mosaic_0001>

<bundles_post_ra>
// kernel: tpu_custom_call.1
= control target key start
LH: loop header
LB: loop body
LE: loop exit
PB: predicated region body
PF: predicated region fallthrough
CT: control target
= control target key end

     0   :  { %vm37_vm0 = vcmask 1041408   ;;  %vm81_vm1 = vcmask 1045504   ;;  %vm58_vm2 = vcmask 1046528   ;;  %s1098_s13 = smov 4   ;;  %vm104_vm3 = vcmask 1044480   ;;  %s1099_s18 = smov 12   ;;  %s1460_s0 = inlined_call_operand.vmem [shape: f32[2,16,4], index: 0, kind: input, shape index: {}]   ;;  %s1461_s1 = inlined_call_operand.vmem [shape: f32[20,16], index: 1, kind: input, shape index: {}]   ;;  %s1462_s2 = inlined_call_operand.vmem [shape: f32[80,16], index: 2, kind: input, shape index: {}]   ;;  %s1463_s5 = inlined_call_operand.vmem [shape: f32[3,16], index: 5, kind: input, shape index: {}]   ;;  %s1464_s6 = inlined_call_operand.vmem [shape: f32[6,16], index: 6, kind: input, shape index: {}]   ;;  %s1465_s3 = inlined_call_operand.vmem [shape: f32[16,16], index: 3, kind: input, shape index: {}]   ;;  %s1466_s4 = inlined_call_operand.vmem [shape: f32[16,16], index: 4, kind: input, shape index: {}]   ;;  %s1467_s7 = inlined_call_operand.vmem [shape: f32[1,16], index: 7, kind: input, shape index: {}]   ;;  %s1468_s8 = inlined_call_operand.vmem [shape: f32[32,16], index: 8, kind: output, shape index: {}]  }
   0x1   :  { %v29_v0 = vld [vmem:[%s1460_s0] sm:$0xff]  ;;  %v30_v1 = vld [vmem:[%s1460_s0 + $0x8] sm:$0xff]  ;;  %v31_v2 = vld [vmem:[%s1460_s0 + $0x10] sm:$0xff]  ;;  %vm127_vm4 = vcmask 1043456   ;;  %s1100_s21 = smov 16   ;;  %vm150_vm5 = vcmask 31744  }
   0x2   :  { %v38_v3 = vrot.slane %v29_v0, 6  ;;  %v39_v4 = vrot.slane %v30_v1, 6  ;;  %v32_v5 = vld [vmem:[%s1460_s0 + $0x18] sm:$0xff]  ;;  %v41_v9 = vrot.slane %v31_v2, 6  ;;  %s1097_s0 = smov 8   ;;  %v170_v26 = vld [vmem:[%s1461_s1] sm:$0xff] }
   0x3   :  { %v42_v16 = vrot.slane %v32_v5, 6  ;;  %v171_v27 = vld [vmem:[%s1461_s1 + $0x8] sm:$0xff]  ;;  %v172_v36 = vld [vmem:[%s1461_s1 + $0x10] sm:$0xf]  ;;  %vm155_vm6 = vcmask 64512   ;;  %vm160_vm7 = vcmask 97280  }
   0x4   :  { %v1162_v6 = vsel %vm37_vm0, %v38_v3, %v39_v4  ;;  %v1165_v7 = vsel %vm37_vm0, 0.0, %v38_v3  ;;  %v52_v8 = vsel %vm37_vm0, %v39_v4, 0.0  ;;  %v1181_v24 = vsel %vm37_vm0, 0.0, %v41_v9  ;;  %s1101_s20 = smov 32   ;;  %s1102_s25 = smov 48  }
   0x5   :  { %v82_v10 = vrot.slane %v1165_v7, 2  ;;  %v83_v11 = vrot.slane %v1162_v6, 2  ;;  %v59_v12 = vrot.slane %v1165_v7, 1  ;;  %v60_v13 = vrot.slane %v1162_v6, 1 }
   0x6   :  { %v85_v14 = vrot.slane %v52_v8, 2  ;;  %v62_v15 = vrot.slane %v52_v8, 1  ;;  %v106_v19 = vrot.slane %v1162_v6, 3  ;;  %v108_v20 = vrot.slane %v52_v8, 3 }
   0x7   :  { %v84_v17 = vsel %vm81_vm1, %v82_v10, %v83_v11  ;;  %v61_v18 = vsel %vm58_vm2, %v59_v12, %v60_v13  ;;  %v105_v23 = vrot.slane %v1165_v7, 3  ;;  %v1184_v25 = vsel %vm37_vm0, %v41_v9, %v42_v16 }
   0x8   :  { %92 = vrot.lane.b32.xlu1 %v84_v17, %s1097_s0  ;;  %69 = vrot.lane.b32.xlu0 %v61_v18, %s1098_s13  ;;  %v86_v21 = vsel %vm81_vm1, %v83_v11, %v85_v14  ;;  %v63_v22 = vsel %vm58_vm2, %v60_v13, %v62_v15  ;;  %v109_v28 = vsel %vm104_vm3, %v106_v19, %v108_v20  ;;  %v64_v29 = vrot.slane %v1181_v24, 1 }
   0x9   :  { %v107_v30 = vsel %vm104_vm3, %v105_v23, %v106_v19  ;;  %v65_v31 = vrot.slane %v1184_v25, 1  ;;  %v128_v32 = vrot.slane %v1165_v7, 4  ;;  %v129_v33 = vrot.slane %v1162_v6, 4 }
   0xa   :  { %v53_v34 = vsel %vm37_vm0, %v42_v16, 0.0  ;;  %v1052_v35 = vpack.c.bf16 %v171_v27, %v170_v26  ;;  %v131_v40 = vrot.slane %v52_v8, 4  ;;  %v88_v41 = vrot.slane %v1184_v25, 2 }
   0xb   :  { %v66_v37 = vsel %vm58_vm2, %v64_v29, %v65_v31  ;;  %v130_v38 = vsel %vm127_vm4, %v128_v32, %v129_v33  ;;  %v67_v39 = vrot.slane %v53_v34, 1  ;;  %v87_v42 = vrot.slane %v1181_v24, 2  ;;  %v934_v29 = vld [vmem:[%s1463_s5] ss:$0 sm:$0xff] }
   0xc   :  { %94 = vrot.lane.b32.xlu1 %v86_v21, %s1097_s0  ;;  %71 = vrot.lane.b32.xlu0 %v63_v22, %s1098_s13  ;;  %v132_v44 = vsel %vm127_vm4, %v129_v33, %v131_v40  ;;  %v90_v45 = vrot.slane %v53_v34, 2  ;;  %v111_v48 = vrot.slane %v1184_v25, 3  ;;  %v113_v49 = vrot.slane %v53_v34, 3 }
   0xd   :  { %1053 = vmatprep.subr.bf16.mxu0 %v1052_v35  ;;  %v68_v43 = vsel %vm58_vm2, %v65_v31, %v67_v39  ;;  %v89_v46 = vsel %vm81_vm1, %v87_v42, %v88_v41  ;;  %v110_v50 = vrot.slane %v1181_v24, 3  ;;  %v134_v51 = vrot.slane %v1184_v25, 4 }
   0xe   :  { %1055 = vmatpush3.bf16.msra.mxu0 %v1052_v35  ;;  %v91_v47 = vsel %vm81_vm1, %v88_v41, %v90_v45  ;;  %v114_v52 = vsel %vm104_vm3, %v111_v48, %v113_v49  ;;  %v136_v54 = vrot.slane %v53_v34, 4  ;;  %v133_v55 = vrot.slane %v1181_v24, 4 }
   0xf   :  { %998 = vmatprep.subr.msk.mxu0 %vm127_vm4, %v172_v36  ;;  %v112_v53 = vsel %vm104_vm3, %v110_v50, %v111_v48  ;;  %vm165_vm8 = vcmask 130048   ;;  %vm178_vm9 = vcmask 162816   ;;  %vm460_vm10 = vcmask 261120  }
  0x10   :  { %117 = vrot.lane.b32.xlu1 %v109_v28, %s1099_s18  ;;  %115 = vrot.lane.b32.xlu0 %v107_v30, %s1099_s18  ;;  %v137_v56 = vsel %vm127_vm4, %v134_v51, %v136_v54  ;;  %v135_v57 = vsel %vm127_vm4, %v133_v55, %v134_v51  ;;  %vm465_vm11 = vcmask 392192   ;;  %vm470_vm12 = vcmask 523264  }
  0x11   :  { %vm490_vm13 = vcmask 654336  }
  0x12   :  { %999 = vmatpush3.msk.msra.mxu0 %vm127_vm4, %v172_v36 }
  0x14   :  { %73 = vrot.lane.b32.xlu1 %v66_v37, %s1098_s13  ;;  %138 = vrot.lane.b32.xlu0 %v130_v38, %s1100_s21 }
  0x18   :  { %75 = vrot.lane.b32.xlu1 %v68_v43, %s1098_s13  ;;  %140 = vrot.lane.b32.xlu0 %v132_v44, %s1100_s21 }
  0x1c   :  { %98 = vrot.lane.b32.xlu1 %v91_v47, %s1097_s0  ;;  %96 = vrot.lane.b32.xlu0 %v89_v46, %s1097_s0 }
  0x20   :  { %121 = vrot.lane.b32.xlu1 %v114_v52, %s1099_s18  ;;  %119 = vrot.lane.b32.xlu0 %v112_v53, %s1099_s18 }
  0x24   :  { %144 = vrot.lane.b32.xlu1 %v137_v56, %s1100_s21  ;;  %142 = vrot.lane.b32.xlu0 %v135_v57, %s1100_s21 }
  0x7a   :  { %v93_v58 = vpop.permute.xlu1 %92  ;;  %v70_v59 = vpop.permute.xlu0 %69 }
  0x7b   :  { %v151_v62 = vsel %vm150_vm5, %v1165_v7, %v70_v59 }
  0x7c   :  { %v156_v1 = vsel %vm155_vm6, %v151_v62, %v93_v58 }
  0x7e   :  { %v95_v60 = vpop.permute.xlu1 %94  ;;  %v72_v61 = vpop.permute.xlu0 %71 }
  0x7f   :  { %v152_v2 = vsel %vm150_vm5, %v1162_v6, %v72_v61 }
  0x80   :  { %v157_v7 = vsel %vm155_vm6, %v152_v2, %v95_v60 }
  0x82   :  { %v118_v63 = vpop.permute.xlu1 %117  ;;  %v116_v0 = vpop.permute.xlu0 %115 }
  0x83   :  { %v161_v3 = vsel %vm160_vm7, %v156_v1, %v116_v0  ;;  %v162_v9 = vsel %vm160_vm7, %v157_v7, %v118_v63 }
  0x86   :  { %v74_v4 = vpop.permute.xlu1 %73  ;;  %v139_v5 = vpop.permute.xlu0 %138 }
  0x87   :  { %v166_v8 = vsel %vm165_vm8, %v161_v3, %v139_v5  ;;  %v153_v16 = vsel %vm150_vm5, %v1181_v24, %v74_v4  ;;  %v475_v24 = vld [vmem:[%s1462_s2] sm:$0xff] }
  0x88   :  { %1000 = vmatprep.mubr.msk.f32.mxu0 %vm178_vm9, %v166_v8 }
  0x8a   :  { %v76_v10 = vpop.permute.xlu1 %75  ;;  %v141_v11 = vpop.permute.xlu0 %140 }
  0x8b   :  { %v167_v12 = vsel %vm165_vm8, %v162_v9, %v141_v11  ;;  %v154_v17 = vsel %vm150_vm5, %v1184_v25, %v76_v10  ;;  %v476_v25 = vld [vmem:[%s1462_s2 + $0x8] sm:$0xff] }
  0x8c   :  { %1001 = vmatmul.mubr.msk.f32.vlgmr.msra.gmra.mrb[0].mxu0 %vm178_vm9, %v167_v12  ;;  %v1056_v28 = vpack.c.bf16 %v476_v25, %v475_v24 }
  0x8e   :  { %v99_v13 = vpop.permute.xlu1 %98  ;;  %v97_v6 = vpop.permute.xlu0 %96  ;;  %1057 = vmatprep.subr.bf16.mxu1 %v1056_v28 }
  0x8f   :  { %v159_v18 = vsel %vm155_vm6, %v154_v17, %v99_v13  ;;  %v158_v19 = vsel %vm155_vm6, %v153_v16, %v97_v6  ;;  %1059 = vmatpush3.bf16.msra.mxu1 %v1056_v28  ;;  %v940_v13 = vld [vmem:[%s1464_s6] ss:$0 sm:$0xff]  ;;  %v941_v17 = vld [vmem:[%s1464_s6 + $0x1] ss:$0 sm:$0xff] }
  0x92   :  { %v122_v14 = vpop.permute.xlu1 %121  ;;  %v120_v15 = vpop.permute.xlu0 %119 }
  0x93   :  { %v164_v20 = vsel %vm160_vm7, %v159_v18, %v122_v14  ;;  %v163_v21 = vsel %vm160_vm7, %v158_v19, %v120_v15  ;;  %v477_v18 = vld [vmem:[%s1462_s2 + $0x10] sm:$0xff]  ;;  %v478_v19 = vld [vmem:[%s1462_s2 + $0x18] sm:$0xff] }
  0x96   :  { %v145_v22 = vpop.permute.xlu1 %144  ;;  %v143_v23 = vpop.permute.xlu0 %142 }
  0x97   :  { %v169_v26 = vsel %vm165_vm8, %v164_v20, %v145_v22  ;;  %v168_v27 = vsel %vm165_vm8, %v163_v21, %v143_v23 }
  0x98   :  { %1003 = vmatprep.mubr.msk.f32.mxu0 %vm178_vm9, %v168_v27 }
  0x99   :  { %1004 = vmatmul.mubr.msk.f32.gmra.mrb[2].mxu0 %vm178_vm9, %v169_v26  ;;  %v1060_v26 = vpack.c.bf16 %v478_v19, %v477_v18 }
  0x9b   :  { %1061 = vmatprep.subr.bf16.mxu1 %v1060_v26 }
  0x9c   :  { %1063 = vmatpush3.bf16.msra.mxu1 %v1060_v26 }
 0x15f   :  { %v1002_v30 = vpop.f32.mrb[0].mxu0 }
 0x160   :  { %v266_v31 = vadd.f32 %v1002_v30, %v934_v29  ;;  %v260_v32 = vpop.f32.mrb[1].mxu0  ;;  %v480_v30 = vld [vmem:[%s1462_s2 + $0x28] sm:$0xff] }
 0x161   :  { %v261_v33 = vadd.f32 %v934_v29, %v260_v32 }
 0x162   :  { %v282_v34 = vsel %vm165_vm8, %v266_v31, 0.0 }
 0x163   :  { %v281_v35 = vsel %vm165_vm8, %v261_v33, 0.0 }
 0x164   :  { %v283_v36 = vadd.f32 %v282_v34, %v281_v35 }
 0x16c   :  { %v1005_v37 = vpop.f32.mrb[2].mxu0 }
 0x16d   :  { %v270_v38 = vpop.f32.mrb[3].mxu0  ;;  %v276_v39 = vadd.f32 %v1005_v37, %v934_v29 }
 0x16e   :  { %v271_v40 = vadd.f32 %v934_v29, %v270_v38  ;;  %v479_v29 = vld [vmem:[%s1462_s2 + $0x20] sm:$0xff] }
 0x16f   :  { %v286_v43 = vsel %vm165_vm8, %v276_v39, 0.0  ;;  %v1064_v35 = vpack.c.bf16 %v480_v30, %v479_v29 }
 0x170   :  { %v284_v41 = vsel %vm165_vm8, %v271_v40, 0.0 }
 0x171   :  { %v285_v42 = vadd.f32 %v284_v41, %v283_v36  ;;  %1065 = vmatprep.subr.bf16.mxu1 %v1064_v35 }
 0x172   :  { %1067 = vmatpush3.bf16.msra.mxu1 %v1064_v35 }
 0x173   :  { %v287_v44 = vadd.f32 %v286_v43, %v285_v42 }
 0x175   :  { %v288_v45 = vrot.slane %v287_v44, 4 }
 0x177   :  { %v289_v46 = vadd.f32 %v288_v45, %v287_v44 }
 0x179   :  { %v290_v47 = vrot.slane %v289_v46, 2 }
 0x17b   :  { %v291_v48 = vadd.f32 %v290_v47, %v289_v46 }
 0x17d   :  { %v292_v49 = vrot.slane %v291_v48, 1 }
 0x17f   :  { %v293_v50 = vadd.f32 %v292_v49, %v291_v48 }
 0x181   :  { %v295_v51 = vmul.f32 0.03125, %v293_v50 }
 0x183   :  { %v296_v52 = vsub.f32 %v261_v33, %v295_v51  ;;  %v297_v53 = vsub.f32 %v266_v31, %v295_v51  ;;  %v298_v54 = vsub.f32 %v271_v40, %v295_v51  ;;  %v299_v55 = vsub.f32 %v276_v39, %v295_v51 }
 0x185   :  { %v300_v56 = vmul.f32 %v296_v52, %v296_v52  ;;  %v301_v57 = vmul.f32 %v297_v53, %v297_v53  ;;  %v302_v58 = vmul.f32 %v298_v54, %v298_v54  ;;  %v303_v59 = vmul.f32 %v299_v55, %v299_v55 }
 0x187   :  { %v304_v60 = vsel %vm165_vm8, %v300_v56, 0.0  ;;  %v305_v61 = vsel %vm165_vm8, %v301_v57, 0.0  ;;  %v307_v63 = vsel %vm165_vm8, %v302_v58, 0.0  ;;  %v309_v1 = vsel %vm165_vm8, %v303_v59, 0.0  ;;  %v481_v58 = vld [vmem:[%s1462_s2 + $0x30] sm:$0xff]  ;;  %v482_v59 = vld [vmem:[%s1462_s2 + $0x38] sm:$0xff] }
 0x188   :  { %v306_v62 = vadd.f32 %v305_v61, %v304_v60  ;;  %v483_v60 = vld [vmem:[%s1462_s2 + $0x40] sm:$0xff]  ;;  %v484_v61 = vld [vmem:[%s1462_s2 + $0x48] sm:$0xff]  ;;  %s1103_s2 = smov 64  }
 0x18a   :  { %v308_v0 = vadd.f32 %v307_v63, %v306_v62 }
 0x18c   :  { %v310_v2 = vadd.f32 %v309_v1, %v308_v0  ;;  %v1068_v1 = vpack.c.bf16 %v482_v59, %v481_v58 }
 0x18e   :  { %v311_v3 = vrot.slane %v310_v2, 4  ;;  %1069 = vmatprep.subr.bf16.mxu1 %v1068_v1 }
 0x18f   :  { %1071 = vmatpush3.bf16.msra.mxu1 %v1068_v1 }
 0x190   :  { %v312_v4 = vadd.f32 %v311_v3, %v310_v2 }
 0x192   :  { %v313_v5 = vrot.slane %v312_v4, 2 }
 0x194   :  { %v314_v8 = vadd.f32 %v313_v5, %v312_v4  ;;  %v1072_v5 = vpack.c.bf16 %v484_v61, %v483_v60 }
 0x196   :  { %v315_v7 = vrot.slane %v314_v8, 1  ;;  %1073 = vmatprep.subr.bf16.mxu1 %v1072_v5 }
 0x197   :  { %1075 = vmatpush3.bf16.msra.mxu1 %v1072_v5 }
 0x198   :  { %v316_v9 = vadd.f32 %v315_v7, %v314_v8 }
 0x19a   :  { %v317_v10 = vmul.f32 0.03125, %v316_v9 }
 0x19c   :  { %v318_v11 = vadd.f32 1e-05, %v317_v10 }
 0x19e   :  { %1091 = vrsqrt.f32 %v318_v11 }
 0x1a8   :  { %v1092_v12 = vpop.eup %1091 }
 0x1a9   :  { %v320_v6 = vmul.f32 %v1092_v12, %v296_v52  ;;  %v321_v14 = vmul.f32 %v1092_v12, %v297_v53  ;;  %v322_v15 = vmul.f32 %v1092_v12, %v298_v54  ;;  %v323_v16 = vmul.f32 %v1092_v12, %v299_v55 }
 0x1ab   :  { %v328_v20 = vmul.f32 %v940_v13, %v320_v6  ;;  %v329_v21 = vmul.f32 %v940_v13, %v321_v14  ;;  %v330_v22 = vmul.f32 %v940_v13, %v322_v15  ;;  %v331_v23 = vmul.f32 %v940_v13, %v323_v16 }
 0x1ad   :  { %v336_v27 = vadd.f32 %v941_v17, %v328_v20  ;;  %v338_v24 = vadd.f32 %v941_v17, %v330_v22  ;;  %v339_v25 = vadd.f32 %v941_v17, %v331_v23  ;;  %v337_v28 = vadd.f32 %v941_v17, %v329_v21 }
 0x1af   :  { %v340_v31 = vmax.f32 %v336_v27, 0.0  ;;  %v342_v32 = vmax.f32 %v338_v24, 0.0  ;;  %v343_v33 = vmax.f32 %v339_v25, 0.0  ;;  %v341_v34 = vmax.f32 %v337_v28, 0.0 }
 0x1b1   :  { %v348_v36 = vrot.slane %v340_v31, 6  ;;  %v349_v37 = vrot.slane %v341_v34, 6  ;;  %v351_v38 = vrot.slane %v342_v32, 6  ;;  %v352_v39 = vrot.slane %v343_v33, 6 }
 0x1b3   :  { %v1294_v40 = vsel %vm37_vm0, %v348_v36, %v349_v37  ;;  %v362_v41 = vsel %vm37_vm0, %v349_v37, 0.0  ;;  %v1298_v42 = vsel %vm37_vm0, 0.0, %v348_v36  ;;  %v1307_v51 = vsel %vm37_vm0, %v351_v38, %v352_v39 }
 0x1b4   :  { %v369_v43 = vrot.slane %v1294_v40, 1  ;;  %v371_v44 = vrot.slane %v362_v41, 1  ;;  %v368_v45 = vrot.slane %v1298_v42, 1  ;;  %v391_v46 = vrot.slane %v1294_v40, 2 }
 0x1b5   :  { %v393_v47 = vrot.slane %v362_v41, 2  ;;  %v390_v50 = vrot.slane %v1298_v42, 2  ;;  %v413_v52 = vrot.slane %v1294_v40, 3  ;;  %v415_v53 = vrot.slane %v362_v41, 3 }
 0x1b6   :  { %v372_v48 = vsel %vm58_vm2, %v369_v43, %v371_v44  ;;  %v370_v49 = vsel %vm58_vm2, %v368_v45, %v369_v43  ;;  %v412_v54 = vrot.slane %v1298_v42, 3  ;;  %v1314_v55 = vsel %vm37_vm0, 0.0, %v351_v38 }
 0x1b7   :  { %380 = vrot.lane.b32.xlu1 %v372_v48, %s1100_s21  ;;  %378 = vrot.lane.b32.xlu0 %v370_v49, %s1100_s21  ;;  %v394_v56 = vsel %vm81_vm1, %v391_v46, %v393_v47  ;;  %v392_v57 = vsel %vm81_vm1, %v390_v50, %v391_v46  ;;  %v416_v62 = vsel %vm104_vm3, %v413_v52, %v415_v53  ;;  %v373_v0 = vrot.slane %v1314_v55, 1 }
 0x1b8   :  { %v414_v63 = vsel %vm104_vm3, %v412_v54, %v413_v52  ;;  %v374_v2 = vrot.slane %v1307_v51, 1  ;;  %v434_v3 = vrot.slane %v1298_v42, 4  ;;  %v435_v4 = vrot.slane %v1294_v40, 4 }
 0x1b9   :  { %v363_v8 = vsel %vm37_vm0, %v352_v39, 0.0  ;;  %v437_v11 = vrot.slane %v362_v41, 4  ;;  %v396_v12 = vrot.slane %v1307_v51, 2  ;;  %v395_v13 = vrot.slane %v1314_v55, 2 }
 0x1ba   :  { %v375_v7 = vsel %vm58_vm2, %v373_v0, %v374_v2  ;;  %v436_v9 = vsel %vm127_vm4, %v434_v3, %v435_v4  ;;  %v376_v10 = vrot.slane %v363_v8, 1  ;;  %v398_v15 = vrot.slane %v363_v8, 2 }
 0x1bb   :  { %402 = vrot.lane.b32.xlu1 %v394_v56, %s1101_s20  ;;  %400 = vrot.lane.b32.xlu0 %v392_v57, %s1101_s20  ;;  %v438_v14 = vsel %vm127_vm4, %v435_v4, %v437_v11  ;;  %v397_v16 = vsel %vm81_vm1, %v395_v13, %v396_v12  ;;  %v418_v18 = vrot.slane %v1307_v51, 3  ;;  %v420_v19 = vrot.slane %v363_v8, 3 }
 0x1bc   :  { %v377_v6 = vsel %vm58_vm2, %v374_v2, %v376_v10  ;;  %v399_v17 = vsel %vm81_vm1, %v396_v12, %v398_v15  ;;  %v417_v20 = vrot.slane %v1314_v55, 3  ;;  %v440_v21 = vrot.slane %v1307_v51, 4 }
 0x1bd   :  { %v421_v22 = vsel %vm104_vm3, %v418_v18, %v420_v19  ;;  %v442_v26 = vrot.slane %v363_v8, 4  ;;  %v439_v27 = vrot.slane %v1314_v55, 4 }
 0x1be   :  { %v419_v23 = vsel %vm104_vm3, %v417_v20, %v418_v18 }
 0x1bf   :  { %424 = vrot.lane.b32.xlu1 %v416_v62, %s1102_s25  ;;  %422 = vrot.lane.b32.xlu0 %v414_v63, %s1102_s25  ;;  %v443_v24 = vsel %vm127_vm4, %v440_v21, %v442_v26  ;;  %v441_v25 = vsel %vm127_vm4, %v439_v27, %v440_v21  ;;  %v942_v63 = vld [vmem:[%s1463_s5 + $0x1] ss:$0 sm:$0xff] }
 0x1c3   :  { %382 = vrot.lane.b32.xlu1 %v375_v7, %s1100_s21  ;;  %444 = vrot.lane.b32.xlu0 %v436_v9, %s1103_s2 }
 0x1c7   :  { %384 = vrot.lane.b32.xlu1 %v377_v6, %s1100_s21  ;;  %446 = vrot.lane.b32.xlu0 %v438_v14, %s1103_s2 }
 0x1cb   :  { %406 = vrot.lane.b32.xlu1 %v399_v17, %s1101_s20  ;;  %404 = vrot.lane.b32.xlu0 %v397_v16, %s1101_s20 }
 0x1cf   :  { %428 = vrot.lane.b32.xlu1 %v421_v22, %s1102_s25  ;;  %426 = vrot.lane.b32.xlu0 %v419_v23, %s1102_s25 }
 0x1d3   :  { %450 = vrot.lane.b32.xlu1 %v443_v24, %s1103_s2  ;;  %448 = vrot.lane.b32.xlu0 %v441_v25, %s1103_s2 }
 0x229   :  { %v381_v28 = vpop.permute.xlu1 %380  ;;  %v379_v29 = vpop.permute.xlu0 %378 }
 0x22a   :  { %v456_v34 = vsel %vm165_vm8, %v1298_v42, %v379_v29  ;;  %v457_v41 = vsel %vm165_vm8, %v1294_v40, %v381_v28 }
 0x22d   :  { %v403_v30 = vpop.permute.xlu1 %402  ;;  %v401_v31 = vpop.permute.xlu0 %400 }
 0x22e   :  { %v461_v35 = vsel %vm460_vm10, %v456_v34, %v401_v31  ;;  %v462_v43 = vsel %vm460_vm10, %v457_v41, %v403_v30 }
 0x231   :  { %v425_v32 = vpop.permute.xlu1 %424  ;;  %v423_v33 = vpop.permute.xlu0 %422 }
 0x232   :  { %v466_v36 = vsel %vm465_vm11, %v461_v35, %v423_v33  ;;  %v467_v44 = vsel %vm465_vm11, %v462_v43, %v425_v32 }
 0x235   :  { %v383_v37 = vpop.permute.xlu1 %382  ;;  %v445_v38 = vpop.permute.xlu0 %444 }
 0x236   :  { %v471_v39 = vsel %vm470_vm12, %v466_v36, %v445_v38  ;;  %v458_v52 = vsel %vm165_vm8, %v1314_v55, %v383_v37  ;;  %v653_v55 = vld [vmem:[%s1465_s3 + $0x8] sm:$0xff] }
 0x237   :  { %1026 = vmatprep.mubr.msk.f32.mxu1 %vm490_vm13, %v471_v39 }
 0x239   :  { %v385_v42 = vpop.permute.xlu1 %384  ;;  %v447_v45 = vpop.permute.xlu0 %446 }
 0x23a   :  { %v472_v46 = vsel %vm470_vm12, %v467_v44, %v447_v45  ;;  %v459_v40 = vsel %vm165_vm8, %v1307_v51, %v385_v42  ;;  %v652_v51 = vld [vmem:[%s1465_s3] sm:$0xff] }
 0x23b   :  { %1027 = vmatmul.mubr.msk.f32.vlgmr.msra.gmra.mrb[0].mxu1 %vm490_vm13, %v472_v46  ;;  %v1076_v62 = vpack.c.bf16 %v653_v55, %v652_v51 }
 0x23d   :  { %v407_v47 = vpop.permute.xlu1 %406  ;;  %v405_v48 = vpop.permute.xlu0 %404  ;;  %1077 = vmatprep.subr.bf16.mxu0 %v1076_v62 }
 0x23e   :  { %v464_v53 = vsel %vm460_vm10, %v459_v40, %v407_v47  ;;  %v463_v54 = vsel %vm460_vm10, %v458_v52, %v405_v48  ;;  %1079 = vmatpush3.bf16.msra.mxu0 %v1076_v62  ;;  %v947_v47 = vld [vmem:[%s1464_s6 + $0x2] ss:$0 sm:$0xff]  ;;  %v948_v40 = vld [vmem:[%s1464_s6 + $0x3] ss:$0 sm:$0xff] }
 0x241   :  { %v429_v49 = vpop.permute.xlu1 %428  ;;  %v427_v50 = vpop.permute.xlu0 %426 }
 0x242   :  { %v469_v56 = vsel %vm465_vm11, %v464_v53, %v429_v49  ;;  %v468_v57 = vsel %vm465_vm11, %v463_v54, %v427_v50 }
 0x245   :  { %v451_v58 = vpop.permute.xlu1 %450  ;;  %v449_v59 = vpop.permute.xlu0 %448 }
 0x246   :  { %v474_v60 = vsel %vm470_vm12, %v469_v56, %v451_v58  ;;  %v473_v61 = vsel %vm470_vm12, %v468_v57, %v449_v59 }
 0x247   :  { %1029 = vmatprep.mubr.msk.f32.mxu1 %vm490_vm13, %v473_v61 }
 0x248   :  { %1030 = vmatmul.mubr.msk.f32.gmra.mrb[2].mxu1 %vm490_vm13, %v474_v60 }
 0x30e   :  { %v1028_v0 = vpop.f32.mrb[0].mxu1 }
 0x30f   :  { %v575_v1 = vadd.f32 %v1028_v0, %v942_v63  ;;  %v569_v2 = vpop.f32.mrb[1].mxu1  ;;  %v820_v0 = vld [vmem:[%s1466_s4] sm:$0xff] }
 0x310   :  { %v570_v3 = vadd.f32 %v942_v63, %v569_v2 }
 0x311   :  { %v591_v4 = vsel %vm165_vm8, %v575_v1, 0.0 }
 0x312   :  { %v590_v5 = vsel %vm165_vm8, %v570_v3, 0.0 }
 0x313   :  { %v592_v8 = vadd.f32 %v591_v4, %v590_v5 }
 0x31b   :  { %v1031_v7 = vpop.f32.mrb[2].mxu1 }
 0x31c   :  { %v579_v9 = vpop.f32.mrb[3].mxu1  ;;  %v585_v10 = vadd.f32 %v1031_v7, %v942_v63 }
 0x31d   :  { %v580_v11 = vadd.f32 %v942_v63, %v579_v9 }
 0x31e   :  { %v595_v6 = vsel %vm165_vm8, %v585_v10, 0.0 }
 0x31f   :  { %v593_v12 = vsel %vm165_vm8, %v580_v11, 0.0 }
 0x320   :  { %v594_v13 = vadd.f32 %v593_v12, %v592_v8 }
 0x322   :  { %v596_v14 = vadd.f32 %v595_v6, %v594_v13 }
 0x324   :  { %v597_v15 = vrot.slane %v596_v14, 4 }
 0x326   :  { %v598_v16 = vadd.f32 %v597_v15, %v596_v14 }
 0x328   :  { %v599_v17 = vrot.slane %v598_v16, 2 }
 0x32a   :  { %v600_v18 = vadd.f32 %v599_v17, %v598_v16 }
 0x32c   :  { %v601_v19 = vrot.slane %v600_v18, 1 }
 0x32e   :  { %v602_v20 = vadd.f32 %v601_v19, %v600_v18 }
 0x330   :  { %v603_v21 = vmul.f32 0.03125, %v602_v20 }
 0x332   :  { %v604_v22 = vsub.f32 %v570_v3, %v603_v21  ;;  %v605_v23 = vsub.f32 %v575_v1, %v603_v21  ;;  %v606_v26 = vsub.f32 %v580_v11, %v603_v21  ;;  %v607_v27 = vsub.f32 %v585_v10, %v603_v21  ;;  %v821_v1 = vld [vmem:[%s1466_s4 + $0x8] sm:$0xff]  ;;  %v949_v3 = vld [vmem:[%s1463_s5 + $0x2] ss:$0 sm:$0xff] }
 0x333   :  { %v1080_v2 = vpack.c.bf16 %v821_v1, %v820_v0 }
 0x334   :  { %v608_v24 = vmul.f32 %v604_v22, %v604_v22  ;;  %v609_v25 = vmul.f32 %v605_v23, %v605_v23  ;;  %v610_v28 = vmul.f32 %v606_v26, %v606_v26  ;;  %v611_v29 = vmul.f32 %v607_v27, %v607_v27 }
 0x335   :  { %1081 = vmatprep.subr.bf16.mxu0 %v1080_v2 }
 0x336   :  { %v612_v30 = vsel %vm165_vm8, %v608_v24, 0.0  ;;  %v613_v31 = vsel %vm165_vm8, %v609_v25, 0.0  ;;  %v615_v33 = vsel %vm165_vm8, %v610_v28, 0.0  ;;  %v617_v35 = vsel %vm165_vm8, %v611_v29, 0.0 }
 0x337   :  { %v614_v32 = vadd.f32 %v613_v31, %v612_v30 }
 0x339   :  { %v616_v34 = vadd.f32 %v615_v33, %v614_v32 }
 0x33b   :  { %v618_v36 = vadd.f32 %v617_v35, %v616_v34 }
 0x33d   :  { %v619_v37 = vrot.slane %v618_v36, 4 }
 0x33f   :  { %v620_v38 = vadd.f32 %v619_v37, %v618_v36 }
 0x341   :  { %v621_v39 = vrot.slane %v620_v38, 2 }
 0x343   :  { %v622_v41 = vadd.f32 %v621_v39, %v620_v38 }
 0x345   :  { %v623_v43 = vrot.slane %v622_v41, 1 }
 0x347   :  { %v624_v44 = vadd.f32 %v623_v43, %v622_v41 }
 0x349   :  { %v625_v42 = vmul.f32 0.03125, %v624_v44 }
 0x34b   :  { %v626_v45 = vadd.f32 1e-05, %v625_v42 }
 0x34d   :  { %1093 = vrsqrt.f32 %v626_v45 }
 0x357   :  { %v1094_v46 = vpop.eup %1093 }
 0x358   :  { %v629_v48 = vmul.f32 %v1094_v46, %v605_v23  ;;  %v630_v49 = vmul.f32 %v1094_v46, %v606_v26  ;;  %v628_v50 = vmul.f32 %v1094_v46, %v604_v22  ;;  %v631_v52 = vmul.f32 %v1094_v46, %v607_v27 }
 0x35a   :  { %v637_v53 = vmul.f32 %v947_v47, %v629_v48  ;;  %v638_v54 = vmul.f32 %v947_v47, %v630_v49  ;;  %v636_v56 = vmul.f32 %v947_v47, %v628_v50  ;;  %v639_v57 = vmul.f32 %v947_v47, %v631_v52  ;;  %v954_v52 = vld [vmem:[%s1464_s6 + $0x4] ss:$0 sm:$0xff] }
 0x35c   :  { %v644_v58 = vadd.f32 %v948_v40, %v636_v56  ;;  %v645_v59 = vadd.f32 %v948_v40, %v637_v53  ;;  %v646_v60 = vadd.f32 %v948_v40, %v638_v54  ;;  %v647_v55 = vadd.f32 %v948_v40, %v639_v57  ;;  %v955_v57 = vld [vmem:[%s1464_s6 + $0x5] ss:$0 sm:$0xff] }
 0x35e   :  { %v648_v61 = vmax.f32 %v644_v58, 0.0  ;;  %v649_v51 = vmax.f32 %v645_v59, 0.0  ;;  %v650_v62 = vmax.f32 %v646_v60, 0.0  ;;  %v651_v63 = vmax.f32 %v647_v55, 0.0 }
 0x360   :  { %1036 = vmatprep.mubr.msk.f32.mxu0 %vm165_vm8, %v648_v61 }
 0x361   :  { %1037 = vmatmul.mubr.msk.f32.vlgmr.msra.gmra.mrb[4].mxu0 %vm165_vm8, %v649_v51 }
 0x362   :  { %1039 = vmatprep.mubr.msk.f32.mxu0 %vm165_vm8, %v650_v62  ;;  %1083 = vmatpush3.bf16.msra.mxu0 %v1080_v2 }
 0x365   :  { %1040 = vmatmul.mubr.msk.f32.gmra.mrb[6].mxu0 %vm165_vm8, %v651_v63 }
 0x434   :  { %v1038_v4 = vpop.f32.mrb[4].mxu0 }
 0x435   :  { %v743_v5 = vadd.f32 %v1038_v4, %v949_v3  ;;  %v737_v8 = vpop.f32.mrb[5].mxu0  ;;  %v956_v4 = vld [vmem:[%s1467_s7] ss:$0 sm:$0xff] }
 0x436   :  { %v738_v7 = vadd.f32 %v949_v3, %v737_v8 }
 0x437   :  { %v759_v9 = vsel %vm165_vm8, %v743_v5, 0.0 }
 0x438   :  { %v758_v10 = vsel %vm165_vm8, %v738_v7, 0.0  ;;  %v1041_v11 = vpop.f32.mrb[6].mxu0 }
 0x439   :  { %v760_v12 = vadd.f32 %v759_v9, %v758_v10  ;;  %v747_v13 = vpop.f32.mrb[7].mxu0  ;;  %v753_v6 = vadd.f32 %v1041_v11, %v949_v3 }
 0x43a   :  { %v748_v14 = vadd.f32 %v949_v3, %v747_v13 }
 0x43b   :  { %v763_v17 = vsel %vm165_vm8, %v753_v6, 0.0 }
 0x43c   :  { %v761_v15 = vsel %vm165_vm8, %v748_v14, 0.0 }
 0x43d   :  { %v762_v16 = vadd.f32 %v761_v15, %v760_v12 }
 0x43f   :  { %v764_v18 = vadd.f32 %v763_v17, %v762_v16 }
 0x441   :  { %v765_v19 = vrot.slane %v764_v18, 4 }
 0x443   :  { %v766_v20 = vadd.f32 %v765_v19, %v764_v18 }
 0x445   :  { %v767_v21 = vrot.slane %v766_v20, 2 }
 0x447   :  { %v768_v22 = vadd.f32 %v767_v21, %v766_v20 }
 0x449   :  { %v769_v23 = vrot.slane %v768_v22, 1 }
 0x44b   :  { %v770_v26 = vadd.f32 %v769_v23, %v768_v22 }
 0x44d   :  { %v771_v27 = vmul.f32 0.03125, %v770_v26 }
 0x44f   :  { %v772_v24 = vsub.f32 %v738_v7, %v771_v27  ;;  %v773_v25 = vsub.f32 %v743_v5, %v771_v27  ;;  %v774_v28 = vsub.f32 %v748_v14, %v771_v27  ;;  %v775_v29 = vsub.f32 %v753_v6, %v771_v27 }
 0x451   :  { %v776_v30 = vmul.f32 %v772_v24, %v772_v24  ;;  %v777_v31 = vmul.f32 %v773_v25, %v773_v25  ;;  %v778_v32 = vmul.f32 %v774_v28, %v774_v28  ;;  %v779_v33 = vmul.f32 %v775_v29, %v775_v29 }
 0x453   :  { %v780_v34 = vsel %vm165_vm8, %v776_v30, 0.0  ;;  %v781_v35 = vsel %vm165_vm8, %v777_v31, 0.0  ;;  %v783_v37 = vsel %vm165_vm8, %v778_v32, 0.0  ;;  %v785_v39 = vsel %vm165_vm8, %v779_v33, 0.0 }
 0x454   :  { %v782_v36 = vadd.f32 %v781_v35, %v780_v34 }
 0x456   :  { %v784_v38 = vadd.f32 %v783_v37, %v782_v36 }
 0x458   :  { %v786_v41 = vadd.f32 %v785_v39, %v784_v38 }
 0x45a   :  { %v787_v43 = vrot.slane %v786_v41, 4 }
 0x45c   :  { %v788_v44 = vadd.f32 %v787_v43, %v786_v41 }
 0x45e   :  { %v789_v42 = vrot.slane %v788_v44, 2 }
 0x460   :  { %v790_v45 = vadd.f32 %v789_v42, %v788_v44 }
 0x462   :  { %v791_v46 = vrot.slane %v790_v45, 1 }
 0x464   :  { %v792_v47 = vadd.f32 %v791_v46, %v790_v45 }
 0x466   :  { %v793_v48 = vmul.f32 0.03125, %v792_v47 }
 0x468   :  { %v794_v49 = vadd.f32 1e-05, %v793_v48 }
 0x46a   :  { %1095 = vrsqrt.f32 %v794_v49 }
 0x474   :  { %v1096_v50 = vpop.eup %1095 }
 0x475   :  { %v797_v40 = vmul.f32 %v1096_v50, %v773_v25  ;;  %v798_v53 = vmul.f32 %v1096_v50, %v774_v28  ;;  %v796_v54 = vmul.f32 %v1096_v50, %v772_v24  ;;  %v799_v56 = vmul.f32 %v1096_v50, %v775_v29 }
 0x477   :  { %v805_v58 = vmul.f32 %v954_v52, %v797_v40  ;;  %v806_v59 = vmul.f32 %v954_v52, %v798_v53  ;;  %v804_v60 = vmul.f32 %v954_v52, %v796_v54  ;;  %v807_v61 = vmul.f32 %v954_v52, %v799_v56 }
 0x479   :  { %v812_v51 = vadd.f32 %v955_v57, %v804_v60  ;;  %v813_v55 = vadd.f32 %v955_v57, %v805_v58  ;;  %v814_v62 = vadd.f32 %v955_v57, %v806_v59  ;;  %v815_v1 = vadd.f32 %v955_v57, %v807_v61 }
 0x47b   :  { %v816_v63 = vmax.f32 %v812_v51, 0.0  ;;  %v817_v0 = vmax.f32 %v813_v55, 0.0  ;;  %v818_v2 = vmax.f32 %v814_v62, 0.0  ;;  %v819_v3 = vmax.f32 %v815_v1, 0.0 }
 0x47d   :  { %1046 = vmatprep.mubr.msk.f32.mxu0 %vm165_vm8, %v816_v63 }
 0x47e   :  { %1047 = vmatmul.mubr.msk.f32.vlgmr.msra.gmra.mrb[8].mxu0 %vm165_vm8, %v817_v0 }
 0x47f   :  { %1049 = vmatprep.mubr.msk.f32.mxu0 %vm165_vm8, %v818_v2 }
 0x482   :  { %1050 = vmatmul.mubr.msk.f32.gmra.mrb[10].mxu0 %vm165_vm8, %v819_v3 }
 0x551   :  { %v1048_v5 = vpop.f32.mrb[8].mxu0 }
 0x552   :  { %v913_v8 = vadd.f32 %v1048_v5, %v956_v4  ;;  %v907_v7 = vpop.f32.mrb[9].mxu0 }
 0x553   :  { %v908_v9 = vadd.f32 %v956_v4, %v907_v7 }
 0x554   :  { %927 = vst.msk [vmem:[%s1468_s8 + $0x8] sm:$0xff] %vm165_vm8, %v913_v8 }
 0x555   :  { %926 = vst.msk [vmem:[%s1468_s8] sm:$0xff] %vm165_vm8, %v908_v9  ;;  %v1051_v10 = vpop.f32.mrb[10].mxu0 }
 0x556   :  { %v923_v11 = vadd.f32 %v1051_v10, %v956_v4  ;;  %v917_v12 = vpop.f32.mrb[11].mxu0 }
 0x557   :  { %v918_v13 = vadd.f32 %v956_v4, %v917_v12 }
 0x558   :  { %929 = vst.msk [vmem:[%s1468_s8 + $0x18] sm:$0xff] %vm165_vm8, %v923_v11 }
 0x559   :  { %928 = vst.msk [vmem:[%s1468_s8 + $0x10] sm:$0xff] %vm165_vm8, %v918_v13 }

</bundles_post_ra>
